<compile_context>
chip_gen: v6e
topology: v6e:2x2x1
jax: 0.10.0
libtpu: 0.0.40
codegen_flags: <defaults>
</compile_context>

<pallas_src>
import numpy as np
import jax
import jax.numpy as jnp
from jax.experimental import pallas as pl
from jax.experimental.pallas import tpu as pltpu


def decoder_kernel(idx_ref, emb_ref, m_ref, bc_ref, out_ref):
    """Fused decoder: one-hot gather (MXU) -> fused (linear + irfft) matmul (MXU)."""
    tb = idx_ref.shape[0]       # batch rows in this block
    e = emb_ref.shape[0]        # num_embeddings

    # Embedding gather as a one-hot matmul: (TB, E) @ (E, L) -> (TB, L).
    onehot = (
        jax.lax.broadcasted_iota(jnp.int32, (tb, e), 1) == idx_ref[...]
    ).astype(jnp.float32)
    lat = jnp.dot(onehot, emb_ref[...], preferred_element_type=jnp.float32)

    # Fused linear + irfft (cosine basis folded into M / bC):
    #   (TB, L) @ (L, N) + (1, N) -> lane-dense (TB, N) output.
    out_ref[...] = (
        jnp.dot(lat, m_ref[...], preferred_element_type=jnp.float32) + bc_ref[...]
    )


def fuse_linear_irfft(w, b):
    """One-time parameter setup (hoisted out of the hot path).

    Folds nn.Linear(latent_dim -> F) and torch.fft.irfft (real-valued spectrum,
    zero imaginary part) into a single (L, N) matrix plus a (1, N) bias,
    computed in float64 numpy for accuracy:
        x[m] = (1/N) * [ X[0] + (-1)^m X[F-1] + 2 * sum_{k=1}^{F-2} X[k] cos(2*pi*k*m/N) ]
    """
    w = np.asarray(w, dtype=np.float64)          # (F, L)  nn.Linear weight layout
    b = np.asarray(b, dtype=np.float64)          # (F,)
    F, _ = w.shape
    N = 2 * (F - 1)

    k = np.arange(F)[:, None]
    m = np.arange(N)[None, :]
    wk = np.where((np.arange(F) == 0) | (np.arange(F) == F - 1), 1.0, 2.0)[:, None]
    C = wk * np.cos(2.0 * np.pi * k * m / N) / N          # (F, N) irfft cosine basis

    M = w.T @ C                                           # (L, N) fused weight
    bC = b[None, :] @ C                                   # (1, N) fused bias
    return jnp.asarray(M, jnp.float32), jnp.asarray(bC, jnp.float32)


def decoder_forward(idx, emb, M, bC):
    """idx: (B,) int32; emb: (E, L) f32; M: (L, N) f32; bC: (1, N) f32 -> (B, N) f32."""
    B = idx.shape[0]
    E, L = emb.shape
    N = M.shape[1]

    # Batch-parallel grid; at B=8 this is a single step, for larger B it shards
    # row blocks across TensorCores.
    TB = B
    grid = (pl.cdiv(B, TB),)

    idx2 = idx.reshape(B, 1).astype(jnp.int32)

    # NOTE: at realistic embedding-table sizes keep `emb` in HBM
    # (memory_space=pl.ANY) and DMA only the needed rows; at E=16 the whole
    # table is ~2 KB so a full VMEM block is the right call.
    return pl.pallas_call(
        decoder_kernel,
        out_shape=jax.ShapeDtypeStruct((B, N), jnp.float32),
        grid=grid,
        in_specs=[
            pl.BlockSpec((TB, 1), lambda i: (i, 0)),   # indices
            pl.BlockSpec((E, L), lambda i: (0, 0)),    # embedding table
            pl.BlockSpec((L, N), lambda i: (0, 0)),    # fused linear+irfft weight
            pl.BlockSpec((1, N), lambda i: (0, 0)),    # fused bias
        ],
        out_specs=pl.BlockSpec((TB, N), lambda i: (i, 0)),
        compiler_params=pltpu.CompilerParams(
            dimension_semantics=("parallel",),
        ),
    )(idx2, emb.astype(jnp.float32), M, bC)


if __name__ == "__main__":
    # Small, deterministic problem: batch=8, latent_dim=32, output_dim=65
    # (-> sample length N = 2*(65-1) = 128), num_embeddings=16.
    B, L, F, E = 8, 32, 65, 16

    key = jax.random.PRNGKey(0)
    k1, k2, k3, k4 = jax.random.split(key, 4)
    emb = jax.random.normal(k1, (E, L), dtype=jnp.float32)
    w = jax.random.normal(k2, (F, L), dtype=jnp.float32) * (1.0 / np.sqrt(L))
    b = jax.random.normal(k3, (F,), dtype=jnp.float32) * 0.01
    idx = jax.random.randint(k4, (B,), 0, E, dtype=jnp.int32)

    # One-time parameter fusion (not part of the per-call hot path).
    M, bC = fuse_linear_irfft(w, b)

    out = decoder_forward(idx, emb, M, bC)
    out = jax.block_until_ready(out)

    # float64 numpy reference of the PyTorch forward: embedding -> linear -> irfft.
    emb64 = np.asarray(emb, np.float64)
    w64 = np.asarray(w, np.float64)
    b64 = np.asarray(b, np.float64)
    ref = np.fft.irfft(emb64[np.asarray(idx)] @ w64.T + b64)

    assert out.shape == ref.shape == (B, 2 * (F - 1))
    # Tolerance accounts for default-precision (bf16-pass) MXU matmuls with f32 accumulation.
    np.testing.assert_allclose(np.asarray(out), ref, rtol=2e-3, atol=2e-3)

    print("KERNEL_OK")
</pallas_src>

<mosaic_0001>
module attributes {stable_mosaic.version = 11 : i64} {
  func.func @decoder_kernel(%arg0: i32, %arg1: memref<8x1xi32, #tpu.memory_space<vmem>>, %arg2: memref<16x32xf32, #tpu.memory_space<vmem>>, %arg3: memref<32x128xf32, #tpu.memory_space<vmem>>, %arg4: memref<1x128xf32, #tpu.memory_space<vmem>>, %arg5: memref<8x128xf32, #tpu.memory_space<vmem>>) attributes {dimension_semantics = [#tpu.dimension_semantics<parallel>], iteration_bounds = array<i64: 1>, scalar_prefetch = 0 : i64, scratch_operands = 0 : i64, tpu.core_type = #tpu.core_type<tc>, window_params = [{transform_indices = @transform_0, window_bounds = array<i64: 8, 1>}, {pipeline_mode = #tpu.pipeline_mode<synchronous>, transform_indices = @transform_1, window_bounds = array<i64: 16, 32>}, {pipeline_mode = #tpu.pipeline_mode<synchronous>, transform_indices = @transform_2, window_bounds = array<i64: 32, 128>}, {pipeline_mode = #tpu.pipeline_mode<synchronous>, transform_indices = @transform_3, window_bounds = array<i64: 1, 128>}, {transform_indices = @transform_4, window_bounds = array<i64: 8, 128>}]} {
    %0 = tpu.iota {dimensions = array<i32: 1>} : vector<8x16xi32>
    %c0 = arith.constant 0 : index
    %c0_0 = arith.constant 0 : index
    %1 = vector.load %arg1[%c0, %c0_0] : memref<8x1xi32, #tpu.memory_space<vmem>>, vector<8x1xi32>
    %2 = vector.broadcast %1 : vector<8x1xi32> to vector<8x16xi32>
    %3 = arith.cmpi eq, %0, %2 : vector<8x16xi32>
    %4 = arith.extui %3 : vector<8x16xi1> to vector<8x16xi32>
    %5 = arith.sitofp %4 : vector<8x16xi32> to vector<8x16xf32>
    %c0_1 = arith.constant 0 : index
    %c0_2 = arith.constant 0 : index
    %6 = vector.load %arg2[%c0_1, %c0_2] : memref<16x32xf32, #tpu.memory_space<vmem>>, vector<16x32xf32>
    %cst = arith.constant dense<0.000000e+00> : vector<8x32xf32>
    %7 = tpu.matmul %5, %6, %cst {dimension_numbers = #tpu.dot_dimension_numbers<[1], [0], [0], [1], [0, 0, 1, 1], [], []>} : vector<8x16xf32>, vector<16x32xf32>, vector<8x32xf32> -> vector<8x32xf32>
    %c0_3 = arith.constant 0 : index
    %c0_4 = arith.constant 0 : index
    %8 = vector.load %arg3[%c0_3, %c0_4] : memref<32x128xf32, #tpu.memory_space<vmem>>, vector<32x128xf32>
    %cst_5 = arith.constant dense<0.000000e+00> : vector<8x128xf32>
    %9 = tpu.matmul %7, %8, %cst_5 {dimension_numbers = #tpu.dot_dimension_numbers<[1], [0], [0], [1], [0, 0, 1, 1], [], []>} : vector<8x32xf32>, vector<32x128xf32>, vector<8x128xf32> -> vector<8x128xf32>
    %c0_6 = arith.constant 0 : index
    %c0_7 = arith.constant 0 : index
    %10 = vector.load %arg4[%c0_6, %c0_7] : memref<1x128xf32, #tpu.memory_space<vmem>>, vector<1x128xf32>
    %11 = vector.broadcast %10 : vector<1x128xf32> to vector<8x128xf32>
    %12 = arith.addf %9, %11 : vector<8x128xf32>
    %c0_8 = arith.constant 0 : index
    %c0_9 = arith.constant 0 : index
    %13 = vector.load %arg5[%c0_8, %c0_9] : memref<8x128xf32, #tpu.memory_space<vmem>>, vector<8x128xf32>
    tpu.vector_store %arg5[%c0_8, %c0_9], %12 {strides = array<i32>} : memref<8x128xf32, #tpu.memory_space<vmem>>, vector<8x128xf32>,
    return
  }
  func.func @transform_0(%arg0: i32) -> (i32, i32) {
    %c0_i32 = arith.constant 0 : i32
    %c0_i32_0 = arith.constant 0 : i32
    return %arg0, %c0_i32 : i32, i32
  }
  func.func @transform_1(%arg0: i32) -> (i32, i32) {
    %c0_i32 = arith.constant 0 : i32
    %c0_i32_0 = arith.constant 0 : i32
    %c0_i32_1 = arith.constant 0 : i32
    return %c0_i32, %c0_i32_0 : i32, i32
  }
  func.func @transform_2(%arg0: i32) -> (i32, i32) {
    %c0_i32 = arith.constant 0 : i32
    %c0_i32_0 = arith.constant 0 : i32
    %c0_i32_1 = arith.constant 0 : i32
    return %c0_i32, %c0_i32_0 : i32, i32
  }
  func.func @transform_3(%arg0: i32) -> (i32, i32) {
    %c0_i32 = arith.constant 0 : i32
    %c0_i32_0 = arith.constant 0 : i32
    %c0_i32_1 = arith.constant 0 : i32
    return %c0_i32, %c0_i32_0 : i32, i32
  }
  func.func @transform_4(%arg0: i32) -> (i32, i32) {
    %c0_i32 = arith.constant 0 : i32
    %c0_i32_0 = arith.constant 0 : i32
    return %arg0, %c0_i32 : i32, i32
  }
}

</mosaic_0001>

<bundles_post_ra>
// kernel: tpu_custom_call.1
= control target key start
LH: loop header
LB: loop body
LE: loop exit
PB: predicated region body
PF: predicated region fallthrough
CT: control target
= control target key end

     0   :  { %9 = vsyncpa [#allocation3], 0  ;;  %s386_s0 = inlined_call_operand.vmem [shape: s32[8,1], index: 0, kind: input, shape index: {}]   ;;  %s387_s1 = inlined_call_operand.hbm [shape: f32[16,32], index: 1, kind: input, shape index: {}]   ;;  %s388_s2 = inlined_call_operand.hbm [shape: f32[32,128], index: 2, kind: input, shape index: {}]   ;;  %s389_s3 = inlined_call_operand.vmem [shape: f32[1,128], index: 3, kind: input, shape index: {}]   ;;  %s390_s4 = inlined_call_operand.hbm [shape: f32[8,128], index: 4, kind: output, shape index: {}]  }
   0x1   :  { %10 = vsyncpa [#allocation6], 0 }
   0x2   :  { %11 = vsyncpa [#allocation4], 0  ;;  %s338_s15 = smov [#allocation2]  }
   0x3   :  { %s19_s16 = sshll.u32 %s338_s15, 4  ;;  %s20_s16 = int_to_ptr.vmem [resolvable:$true] %s19_s16 }
   0x4   :  { %s280_s17 = scalar_lea.vmem %s20_s16, 256  ;;  %p285_p1 = scmp.lt.s32.totalorder %s20_s16, %s20_s16 }
   0x5   :  { %p281_p0 = scmp.ne.s32.totalorder %s20_s16, %s280_s17  ;;  %p286_p2 = scmp.lt.s32.totalorder %s280_s17, %s280_s17 }
   0x7   :  { %p287_p3 = por %p286_p2, %p285_p1 }
   0x9   :  { %p288_p4 = pnand %p287_p3, %p281_p0 }
   0xb   :  { %291 = shalt.err (!%p288_p4)
}
   0xc   :  { %s339_s18 = smov 128   ;;  %s340_s19 = smov 8  }
   0xd   :  { %25 = dma.hbm_to_vmem [thread:$0]  %s387_s1, 256, %s20_s16, [#allocation3], %s339_s18, %s339_s18, %s340_s19  }
   0xe   :  { %s341_s22 = smov [#allocation5]  }
   0xf   :  { %s31_s23 = sshll.u32 %s341_s22, 4  ;;  %s32_s23 = int_to_ptr.vmem [resolvable:$true] %s31_s23 }
  0x10   :  { %s300_s24 = scalar_lea.vmem %s32_s23, 512  ;;  %p305_p6 = scmp.lt.s32.totalorder %s32_s23, %s32_s23 }
  0x11   :  { %p301_p5 = scmp.ne.s32.totalorder %s32_s23, %s300_s24  ;;  %p306_p7 = scmp.lt.s32.totalorder %s300_s24, %s300_s24 }
  0x13   :  { %p307_p8 = por %p306_p7, %p305_p6 }
  0x15   :  { %p308_p9 = pnand %p307_p8, %p301_p5 }
  0x17   :  { %311 = shalt.err (!%p308_p9)
}
  0x18   :  { %37 = dma.hbm_to_vmem [thread:$0]  %s388_s2, 512, %s32_s23, [#allocation6], %s339_s18, %s339_s18, %s340_s19  }
  0x19   :  { %332 = dma.done.wait [#allocation3], 256  }
  0x1a   :  { %333 = vsyncadd [#allocation3], 4294967040 }
  0x1b   :  { %334 = dma.done.wait [#allocation6], 512  }
  0x1c   :  { %335 = vsyncadd [#allocation6], 4294966784  ;;  %v342_v0 = vmov 0   ;;  %v343_v1 = vmov 0.0   ;;  %vm344_vm0 = vmmov 0   ;;  %v48_v2 = vld [vmem:[%s386_s0] sm:$0xff]  ;;  %v46_v8 = vlaneseq }
  0x1d   :  { %271 = vset.pattern.permute.xlu0 %v342_v0  ;;  %245 = vmatprep.subr.mxu0 %v343_v1  ;;  %v56_v3 = vld [vmem:[#allocation2 + $0x8] sm:$0xff]  ;;  %v55_v4 = vld [vmem:[#allocation2] sm:$0xff]  ;;  %v132_v7 = vld [vmem:[#allocation5 + $0x8] sm:$0xff]  ;;  %vm57_vm1 = vcmask 130048   ;;  %vm142_vm3 = vcmask 261120   ;;  %s345_s28 = smov [#allocation7]  }
  0x1e   :  { %252 = vmatprep.subr.mxu1 %v343_v1  ;;  %249 = vmatprep.mubr.msk.f32.mxu0 %vm344_vm0, %v343_v1  ;;  %v134_v5 = vld [vmem:[#allocation5 + $0x18] sm:$0xff]  ;;  %v133_v6 = vld [vmem:[#allocation5 + $0x10] sm:$0xff]  ;;  %v47_v9 = vand.u32 127, %v46_v8  ;;  %v131_v12 = vld [vmem:[#allocation5] sm:$0xff]  ;;  %s223_s29 = sshll.u32 %s345_s28, 4  ;;  %s224_s29 = int_to_ptr.vmem [resolvable:$true] %s223_s29 }
  0x1f   :  { %260 = vmatprep.mubr.msk.f32.mxu1 %vm344_vm0, %v343_v1  ;;  %50 = vperm.xlu0 %271, %v48_v2   ;;  %v235_v15 = vld [vmem:[%s389_s3] ss:$0 sm:$0xff]  ;;  %s312_s30 = scalar_lea.vmem %s224_s29, 128  ;;  %p317_p11 = scmp.lt.s32.totalorder %s224_s29, %s224_s29 }
  0x20   :  { %246 = vmatpush3.msra.mxu0 %v56_v3  ;;  %253 = vmatpush3.msra.mxu1 %v134_v5  ;;  %p313_p10 = scmp.ne.s32.totalorder %s224_s29, %s312_s30  ;;  %p318_p12 = scmp.lt.s32.totalorder %s312_s30, %s312_s30 }
  0x21   :  { %247 = vmatprep.subr.mxu0 %v343_v1  ;;  %254 = vmatprep.subr.mxu1 %v343_v1 }
  0x22   :  { %248 = vmatpush3.msra.mxu0 %v55_v4  ;;  %255 = vmatpush3.msra.mxu1 %v133_v6  ;;  %p319_p13 = por %p318_p12, %p317_p11 }
  0x23   :  { %256 = vmatprep.subr.mxu1 %v343_v1 }
  0x24   :  { %257 = vmatpush3.msra.mxu1 %v132_v7  ;;  %p320_p0 = pnand %p319_p13, %p313_p10 }
  0x25   :  { %258 = vmatprep.subr.mxu1 %v343_v1 }
  0x26   :  { %259 = vmatpush3.msra.mxu1 %v131_v12 }
  0x9a   :  { %v51_v10 = vpop.permute.xlu0 %50 }
  0x9b   :  { %vm52_vm2 = vcmp.eq.s32.totalorder %v47_v9, %v51_v10 }
  0x9c   :  { %v233_v11 = vsel %vm52_vm2, 1.0, %v343_v1 }
  0x9d   :  { %250 = vmatmul.mubr.msk.f32.vlgmr.msra.gmra.mxu0 %vm57_vm1, %v233_v11 }
 0x15d   :  { %v127_v13 = vpop.f32.mrf.mxu0 }
 0x15e   :  { %261 = vmatmul.mubr.msk.f32.vlgmr.msra.gmra.mxu1 %vm142_vm3, %v127_v13 }
 0x15f   :  { %v251_v14 = vpop.f32.mrf.mxu0 }
 0x21e   :  { %v212_v16 = vpop.f32.mrf.mxu1 }
 0x21f   :  { %v213_v17 = vadd.f32 %v235_v15, %v212_v16 }
 0x220   :  { %v262_v18 = vpop.f32.mrf.mxu1 }
 0x221   :  { %216 = vst [vmem:[#allocation7] sm:$0xff] %v213_v17 }
 0x222   :  { %323 = shalt.err (!%p320_p0)
}
 0x223   :  { %226 = dma.vmem_to_hbm [thread:$0]  %s224_s29, 128, %s390_s4, [#allocation4]  }
 0x224   :  { %336 = dma.done.wait [#allocation4], 128  }
 0x225   :  { %337 = vsyncadd [#allocation4], 4294967168 }
 0x226   :  { %230 = vsyncpa [#allocation3], 1 }
 0x227   :  { %231 = vsyncpa [#allocation6], 1 }
 0x228   :  { %232 = vsyncpa [#allocation4], 1 }

</bundles_post_ra>
